<compile_context>
chip_gen: v5e
topology: v5e:2x2
jax: 0.10.0
libtpu: 0.0.40
codegen_flags: <defaults>
</compile_context>

<pallas_src>
import functools

import jax
import jax.numpy as jnp
from jax import lax
from jax.experimental import pallas as pl
from jax.experimental.pallas import tpu as pltpu


def _ce_kernel(logits_ref, targets_ref, loss_ref):
    """Per-pixel CE over a (1, C, TILE) logits block (pixels on lanes)."""
    logits = logits_ref[0].astype(jnp.float32)              # (C, TILE)
    tgt = targets_ref[0].astype(jnp.int32)                   # (1, TILE)

    # Target-logit pick from the unshifted logits: no data dependence on the
    # max reduce, so VPU select + sublane reduce overlap the max in the
    # VLIW schedule.
    cls = lax.broadcasted_iota(jnp.int32, logits.shape, 0)   # (C, TILE)
    x_tgt = jnp.sum(jnp.where(cls == tgt, logits, 0.0), axis=0, keepdims=True)

    m = jnp.max(logits, axis=0, keepdims=True)                # (1, TILE)
    denom = jnp.sum(jnp.exp(logits - m), axis=0, keepdims=True)

    # Partial last tile: invalid lanes may hold garbage, but all reductions are
    # sublane-only (per-lane independent) and Pallas clips the partial output
    # write-back, so no masking is required here.
    loss_ref[0] = m + jnp.log(denom) - x_tgt                  # (1, TILE)


def _choose_tile(hw: int, c: int, logit_itemsize: int, tgt_itemsize: int,
                 n: int, vmem_budget: int = 12 << 20) -> int:
    """Largest 128-multiple lane tile that fits a conservative VMEM budget.

    Accounts for sublane padding of the channel axis and the in-kernel f32
    temporaries; caps the tile so there are >= ~4 grid steps for megacore.
    """
    c_sub = pl.cdiv(c, 8) * 8                      # sublane-padded channel rows
    # Double-buffered logits/targets/loss blocks + ~4 f32 (c_sub, tile) temps.
    bytes_per_lane = 2 * (c_sub * logit_itemsize + tgt_itemsize + 4) + 4 * c_sub * 4
    t = vmem_budget // bytes_per_lane
    t = max(128, min(t, 1 << 16))                  # lane cap lifted for small C
    # Keep at least ~4 total grid steps so both v7x TensorCores get work.
    steps_per_image = pl.cdiv(4, max(n, 1))
    t = min(t, max(128, (pl.cdiv(hw, steps_per_image) // 128) * 128))
    # Don't over-tile tiny images.
    t = min(t, pl.cdiv(hw, 128) * 128)
    return (t // 128) * 128


def per_pixel_cross_entropy(preds: jax.Array, targets: jax.Array) -> jax.Array:
    """preds (N,C,H,W), targets (N,H,W) int -> (N*H*W,) f32 per-pixel CE."""
    n, c, h, w = preds.shape
    hw = h * w
    logit_isz = jnp.dtype(preds.dtype).itemsize
    tgt_isz = jnp.dtype(targets.dtype).itemsize

    logits = preds.reshape(n, c, hw)               # free reshape, no transpose
    tgt = targets.reshape(n, 1, hw)                # keep native dtype; cast in-kernel

    tile = _choose_tile(hw, c, logit_isz, tgt_isz, n)
    grid_hw = pl.cdiv(hw, tile)                    # ragged: partial last block OK

    cost = pl.CostEstimate(
        flops=6 * n * hw * c,
        transcendentals=n * hw * (c + 1),
        bytes_accessed=n * hw * (c * logit_isz + tgt_isz + 4),
    )

    losses = pl.pallas_call(
        _ce_kernel,
        out_shape=jax.ShapeDtypeStruct((n, 1, hw), jnp.float32),
        grid_spec=pltpu.PrefetchScalarGridSpec(
            num_scalar_prefetch=0,
            grid=(n, grid_hw),
            in_specs=[
                # If xprof ever shows exposed DMA at short steps, bump the
                # logits spec to pipeline_mode=pl.Buffered(3).
                pl.BlockSpec((1, c, tile), lambda i, j: (i, 0, j)),   # logits
                pl.BlockSpec((1, 1, tile), lambda i, j: (i, 0, j)),   # targets
            ],
            out_specs=pl.BlockSpec((1, 1, tile), lambda i, j: (i, 0, j)),
        ),
        compiler_params=pltpu.CompilerParams(
            dimension_semantics=("parallel", "parallel"),
            vmem_limit_bytes=32 * 1024 * 1024,
        ),
        cost_estimate=cost,
    )(logits, tgt)

    return losses.reshape(n * hw)


def _top_k_mean(loss: jax.Array, num_keep: int) -> jax.Array:
    """Exact mean of the `num_keep` largest entries of `loss`, without a sort.

    Monotone-maps f32 -> uint32 keys (order preserving), bisects 32 bits over
    the key space (one streaming count per bit) to recover the exact k-th
    largest value, then a masked sum/count pass yields the exact top-k mean
    (ties at the threshold handled exactly).
    """
    k = jnp.int32(num_keep)
    bits = lax.bitcast_convert_type(loss, jnp.uint32)
    # Total order on keys == total order on the float values.
    keys = jnp.where(bits >> 31 != 0, ~bits, bits | jnp.uint32(0x80000000))

    def bit_step(i, v):
        shift = (31 - i).astype(jnp.uint32)
        cand = v | jnp.left_shift(jnp.uint32(1), shift)
        cnt = jnp.sum((keys >= cand).astype(jnp.int32))
        return jnp.where(cnt >= k, cand, v)

    kth_key = lax.fori_loop(0, 32, bit_step, jnp.uint32(0))
    kth_bits = jnp.where(kth_key >> 31 != 0,
                         kth_key & jnp.uint32(0x7FFFFFFF), ~kth_key)
    kth_val = lax.bitcast_convert_type(kth_bits, jnp.float32)

    gt = loss > kth_val
    sum_gt = jnp.sum(jnp.where(gt, loss, 0.0))
    cnt_gt = jnp.sum(gt.astype(jnp.int32))
    total = sum_gt + (k - cnt_gt).astype(jnp.float32) * kth_val
    return total / jnp.float32(num_keep)


@functools.partial(jax.jit, static_argnames=("top_k_percent",))
def tpa_criterion(preds: jax.Array, targets: jax.Array,
                  top_k_percent: float = 0.8) -> jax.Array:
    """OHEM cross-entropy. preds: (N, C, H, W) float, targets: (N, H, W) int."""
    assert 0.5 < top_k_percent <= 1.0
    n, c, h, w = preds.shape
    loss = per_pixel_cross_entropy(preds, targets)         # (N*H*W,) f32
    num_keep = int(top_k_percent * (n * h * w))             # matches torch numel()
    return _top_k_mean(loss, num_keep)


def _reference(preds, targets, top_k_percent=0.8):
    n, c, h, w = preds.shape
    logits = jnp.transpose(preds, (0, 2, 3, 1)).reshape(-1, c).astype(jnp.float32)
    tgt = targets.reshape(-1)
    logp = jax.nn.log_softmax(logits, axis=-1)
    loss = -jnp.take_along_axis(logp, tgt[:, None], axis=-1)[:, 0]
    num_keep = int(top_k_percent * loss.shape[0])
    return jnp.mean(jnp.sort(loss)[::-1][:num_keep])


if __name__ == "__main__":
    key = jax.random.PRNGKey(0)
    k1, k2, k3, k4 = jax.random.split(key, 4)

    # Main check: HW a multiple of 128 (full tiles only).
    N, C, H, W = 2, 4, 16, 16
    preds = jax.random.normal(k1, (N, C, H, W), dtype=jnp.float32)
    targets = jax.random.randint(k2, (N, H, W), 0, C, dtype=jnp.int32)

    out = jax.block_until_ready(tpa_criterion(preds, targets, top_k_percent=0.8))
    ref = _reference(preds, targets, top_k_percent=0.8)
    assert jnp.allclose(out, ref, rtol=1e-5, atol=1e-5), (out, ref)

    # Second check: ragged spatial size exercises the partial-last-tile
    # (clipped write-back, no wrapper-side padding) path.
    N2, C2, H2, W2 = 2, 4, 10, 13
    preds2 = jax.random.normal(k3, (N2, C2, H2, W2), dtype=jnp.float32)
    targets2 = jax.random.randint(k4, (N2, H2, W2), 0, C2, dtype=jnp.int32)

    out2 = jax.block_until_ready(tpa_criterion(preds2, targets2, top_k_percent=0.8))
    ref2 = _reference(preds2, targets2, top_k_percent=0.8)
    assert jnp.allclose(out2, ref2, rtol=1e-5, atol=1e-5), (out2, ref2)

    print("KERNEL_OK")
</pallas_src>

<mosaic_0001>
module attributes {stable_mosaic.version = 11 : i64} {
  func.func @_ce_kernel(%arg0: i32, %arg1: i32, %arg2: memref<1x4x128xf32, #tpu.memory_space<vmem>>, %arg3: memref<1x1x128xi32, #tpu.memory_space<vmem>>, %arg4: memref<1x1x128xf32, #tpu.memory_space<vmem>>) attributes {dimension_semantics = [#tpu.dimension_semantics<parallel>, #tpu.dimension_semantics<parallel>], iteration_bounds = array<i64: 2, 2>, scalar_prefetch = 0 : i64, scratch_operands = 0 : i64, tpu.core_type = #tpu.core_type<tc>, window_params = [{transform_indices = @transform_0, window_bounds = array<i64: 1, 4, 128>}, {transform_indices = @transform_1, window_bounds = array<i64: 1, 1, 128>}, {transform_indices = @transform_2, window_bounds = array<i64: 1, 1, 128>}]} {
    %c0 = arith.constant 0 : index
    %c0_0 = arith.constant 0 : index
    %c0_1 = arith.constant 0 : index
    %0 = vector.load %arg2[%c0, %c0_0, %c0_1] : memref<1x4x128xf32, #tpu.memory_space<vmem>>, vector<1x4x128xf32>
    %1 = vector.shape_cast %0 : vector<1x4x128xf32> to vector<4x128xf32>
    %c0_2 = arith.constant 0 : index
    %c0_3 = arith.constant 0 : index
    %c0_4 = arith.constant 0 : index
    %2 = vector.load %arg3[%c0_2, %c0_3, %c0_4] : memref<1x1x128xi32, #tpu.memory_space<vmem>>, vector<1x1x128xi32>
    %3 = vector.shape_cast %2 : vector<1x1x128xi32> to vector<1x128xi32>
    %4 = tpu.iota {dimensions = array<i32: 0>} : vector<4x128xi32>
    %5 = vector.broadcast %3 : vector<1x128xi32> to vector<4x128xi32>
    %6 = arith.cmpi eq, %4, %5 : vector<4x128xi32>
    %cst = arith.constant 0.000000e+00 : f32
    %7 = vector.broadcast %cst : f32 to vector<4x128xf32>
    %8 = arith.select %6, %1, %7 : vector<4x128xi1>, vector<4x128xf32>
    %cst_5 = arith.constant dense<0.000000e+00> : vector<128xf32>
    %9 = vector.multi_reduction <add>, %8, %cst_5 [0] : vector<4x128xf32> to vector<128xf32>
    %10 = vector.shape_cast %9 : vector<128xf32> to vector<1x128xf32>
    %cst_6 = arith.constant dense<0xFF800000> : vector<128xf32>
    %11 = vector.multi_reduction <maximumf>, %1, %cst_6 [0] : vector<4x128xf32> to vector<128xf32>
    %12 = vector.shape_cast %11 : vector<128xf32> to vector<1x128xf32>
    %13 = vector.broadcast %12 : vector<1x128xf32> to vector<4x128xf32>
    %14 = arith.subf %1, %13 : vector<4x128xf32>
    %15 = math.exp %14 : vector<4x128xf32>
    %cst_7 = arith.constant dense<0.000000e+00> : vector<128xf32>
    %16 = vector.multi_reduction <add>, %15, %cst_7 [0] : vector<4x128xf32> to vector<128xf32>
    %17 = vector.shape_cast %16 : vector<128xf32> to vector<1x128xf32>
    %18 = math.log %17 : vector<1x128xf32>
    %19 = arith.addf %12, %18 : vector<1x128xf32>
    %20 = arith.subf %19, %10 : vector<1x128xf32>
    %c0_8 = arith.constant 0 : index
    %c0_9 = arith.constant 0 : index
    %c0_10 = arith.constant 0 : index
    %21 = vector.load %arg4[%c0_8, %c0_9, %c0_10] : memref<1x1x128xf32, #tpu.memory_space<vmem>>, vector<1x1x128xf32>
    %22 = vector.shape_cast %21 : vector<1x1x128xf32> to vector<1x128xf32>
    %23 = vector.shape_cast %20 : vector<1x128xf32> to vector<1x1x128xf32>
    tpu.vector_store %arg4[%c0_8, %c0_9, %c0_10], %23 {strides = array<i32>} : memref<1x1x128xf32, #tpu.memory_space<vmem>>, vector<1x1x128xf32>,
    return
  }
  func.func @transform_0(%arg0: i32, %arg1: i32) -> (i32, i32, i32) {
    %c0_i32 = arith.constant 0 : i32
    %c0_i32_0 = arith.constant 0 : i32
    return %arg0, %c0_i32, %arg1 : i32, i32, i32
  }
  func.func @transform_1(%arg0: i32, %arg1: i32) -> (i32, i32, i32) {
    %c0_i32 = arith.constant 0 : i32
    %c0_i32_0 = arith.constant 0 : i32
    return %arg0, %c0_i32, %arg1 : i32, i32, i32
  }
  func.func @transform_2(%arg0: i32, %arg1: i32) -> (i32, i32, i32) {
    %c0_i32 = arith.constant 0 : i32
    %c0_i32_0 = arith.constant 0 : i32
    return %arg0, %c0_i32, %arg1 : i32, i32, i32
  }
}

</mosaic_0001>

<bundles_post_ra>
// kernel: tpa_criterion.1
= control target key start
LH: loop header
LB: loop body
LE: loop exit
PB: predicated region body
PF: predicated region fallthrough
CT: control target
= control target key end

     0   :  { %s444_s9 = smov 0   ;;  %s446_s10 = smov 0   ;;  %s506_s0 = inlined_call_operand.vmem [shape: f32[2,4,256], index: 0, kind: input, shape index: {}]   ;;  %s507_s1 = inlined_call_operand.vmem [shape: s32[2,1,256], index: 1, kind: input, shape index: {}]   ;;  %s508_s2 = inlined_call_operand.vmem [shape: f32[2,1,256], index: 2, kind: output, shape index: {}]  }
   0x1   :  { %s448_s11 = smov 0   ;;  %s450_s12 = smov 0  }
   0x2   :  { %s452_s13 = smov 0  }
   0x3 LB: > { %s21_s14 = sadd.s32 1, %s419_s11  ;;  %s24_s15 = sadd.s32 1, %s423_s12  ;;  %s427_s13 = sphi %s452_s13, %s12_s13   ;;  %s423_s12 = sphi %s450_s12, %s512_s12   ;;  %s419_s11 = sphi %s448_s11, %s511_s11   ;;  %s415_s10 = sphi %s446_s10, %s510_s10   ;;  %s411_s9 = sphi %s444_s9, %s509_s9  }
   0x4   : > { %p22_p0 = scmp.ge.s32.totalorder %s21_s14, 2  ;;  %p337_p1 = scmp.ge.s32.totalorder %s427_s13, 1 }
   0x5   : > { %p145_p2 = scmp.lt.s32.totalorder %s427_s13, 5 }
   0x6   : > { %s514_s14 = smov (%p22_p0, %s21_s14), 0  ;;  %s516_s15 = smov (!%p22_p0, %s24_s15), %s423_s12 }
   0x7   : > { %p146_p3 = pnand %p337_p1, %p145_p2  ;;  %p26_p4 = scmp.ge.s32.totalorder %s516_s15, 2 }
   0x8   : > { %p179_p5 = scmp.lt.s32.totalorder (!%p146_p3), %s415_s10, 1  ;;  %p181_p6 = scmp.lt.s32.totalorder (!%p146_p3), %s411_s9, 1 }
   0x9   : > { %s518_s15 = smov (%p26_p4, %s516_s15), 0  ;;  %149 = sbr.rel (%p146_p3) target bundleno = 71 (0x47), region = 28 }
   0xe   : > { %s520_s10 = smov (!%p179_p5, %s415_s10), 1  ;;  %s522_s9 = smov (!%p181_p6, %s411_s9), 1  ;;  %vm208_vm0 = vcmask 1043456   ;;  %v203_v5 = vlaneseq }
   0xf   : > { %s338_s16 = sshll.u32 %s520_s10, 1 }
  0x10   : > { %s474_s17 = sadd.s32 %s338_s16, %s522_s9  ;;  %v204_v8 = vshrl.u32 %v203_v5, 7 }
  0x11   : > { %s339_s18 = sshll.u32 %s474_s17, 2  ;;  %s193_s21 = scalar_lea.vmem %s507_s1, %s474_s17 }
  0x12   : > { %s186_s24 = scalar_lea.vmem %s506_s0, %s339_s18  ;;  %v384_v9 = vld [vmem:[%s193_s21] ss:$0 sm:$0xff]  ;;  %s200_s27 = scalar_lea.vmem %s508_s2, %s474_s17 }
  0x13   : > { %v201_v0 = vld [vmem:[%s186_s24] sm:$0xf]  ;;  %vm206_vm1 = vcmp.eq.s32.totalorder %v204_v8, %v384_v9 }
  0x14   : > { %v216_v1 = vsel %vm208_vm0, %v201_v0, -inf  ;;  %v207_v13 = vsel %vm206_vm1, %v201_v0, 0.0 }
  0x15   : > { %v217_v2 = vrot.slane %v216_v1, 4  ;;  %v209_v14 = vsel %vm208_vm0, %v207_v13, 0.0 }
  0x16   : > { %v210_v16 = vrot.slane %v209_v14, 4 }
  0x17   : > { %v218_v3 = vmax.f32 %v216_v1, %v217_v2 }
  0x18   : > { %v211_v20 = vadd.f32 %v210_v16, %v209_v14 }
  0x19   : > { %v219_v4 = vrot.slane %v218_v3, 2 }
  0x1a   : > { %v212_v23 = vrot.slane %v211_v20, 2 }
  0x1b   : > { %v220_v6 = vmax.f32 %v218_v3, %v219_v4 }
  0x1c   : > { %v213_v26 = vadd.f32 %v212_v23, %v211_v20 }
  0x1d   : > { %v221_v7 = vrot.slane %v220_v6, 1 }
  0x1e   : > { %v214_v27 = vrot.slane %v213_v26, 1 }
  0x1f   : > { %v222_v10 = vmax.f32 %v220_v6, %v221_v7 }
  0x20   : > { %v215_v29 = vadd.f32 %v214_v27, %v213_v26 }
  0x21   : > { %v223_v11 = vsub.f32 %v201_v0, %v222_v10 }
  0x23   : > { %v224_v12 = vmul.f32 1.442695, %v223_v11 }
  0x25   : > { %385 = vpow2.f32 %v224_v12 }
  0x2b   : > { %v386_v15 = vpop.eup %385 }
  0x2c   : > { %v226_v17 = vsel %vm208_vm0, %v386_v15, 0.0 }
  0x2d   : > { %v227_v18 = vrot.slane %v226_v17, 4 }
  0x2f   : > { %v228_v19 = vadd.f32 %v227_v18, %v226_v17 }
  0x31   : > { %v229_v21 = vrot.slane %v228_v19, 2 }
  0x33   : > { %v230_v22 = vadd.f32 %v229_v21, %v228_v19 }
  0x35   : > { %v231_v24 = vrot.slane %v230_v22, 1 }
  0x37   : > { %v232_v25 = vadd.f32 %v231_v24, %v230_v22 }
  0x39   : > { %387 = vlog2.f32 %v232_v25 }
  0x3f   : > { %v388_v28 = vpop.eup %387 }
  0x40   : > { %v234_v30 = vmul.f32 0.6931472, %v388_v28 }
  0x42   : > { %v235_v31 = vadd.f32 %v234_v30, %v222_v10 }
  0x44   : > { %v236_v32 = vsub.f32 %v235_v31, %v215_v29 }
  0x46   : > { %237 = vst [vmem:[%s200_s27] sm:$0x1] %v236_v32 }
  0x47 PF: > { %s12_s13 = sadd.s32 1, %s427_s13   ;;  %s509_s9 = smov %s419_s11 }
  0x48   : > { %p9_p7 = scmp.ge.s32.totalorder %s12_s13, 6   ;;  %s510_s10 = smov %s423_s12 }
  0x49   : > { %s511_s11 = smov %s514_s14  ;;  %s512_s12 = smov %s518_s15 }
  0x4a   :  { %11 = sbr.rel (!%p9_p7) target bundleno = 3 (0x3), region = 61 }

</bundles_post_ra>
